<compile_context>
chip_gen: v5e
topology: v5e:2x2
jax: 0.10.0
libtpu: 0.0.40
codegen_flags: <defaults>
</compile_context>

<pallas_src>
import functools
import math

import jax
import jax.numpy as jnp
from jax.experimental import pallas as pl
from jax.experimental.pallas import tpu as pltpu

LANE = 128


def _round_up(x, m):
    return (x + m - 1) // m * m


def _sage_layer_kernel(a_ref, xk_ref, xi_ref, inv_ref, ws_ref, wn_ref, b_ref,
                       o_ref, acc_ref, *, apply_relu):
    """One mean-aggregator SAGEConv layer, row/K tiled.

    Grid: (num_row_tiles, num_k_tiles); the K (node-column) axis is innermost.
    a_ref holds a 0/1 adjacency-mask tile (compact dtype).  acc_ref
    (block_m, f_pad) f32 accumulates sum_k mask[i, k] @ X[k] across K.
    Finalize applies the exact f32 mean scale and both projections:
        out = x_i @ W_self + (inv_deg_i * acc) @ W_neigh + b   [+ ReLU]
    stored as one lane-dense (block_m, h_pad) block.
    """
    k = pl.program_id(1)

    @pl.when(k == 0)
    def _init():
        acc_ref[...] = jnp.zeros_like(acc_ref)

    # 0/1 mask times features; accumulate in f32 on the MXU.
    acc_ref[...] += jnp.dot(a_ref[...].astype(xk_ref.dtype), xk_ref[...],
                            preferred_element_type=jnp.float32)

    @pl.when(k == pl.num_programs(1) - 1)
    def _finalize():
        neigh = acc_ref[...] * inv_ref[...]            # exact f32 1/in_deg scale
        out = jnp.dot(xi_ref[...].astype(jnp.float32), ws_ref[...],
                      preferred_element_type=jnp.float32)
        out = out + jnp.dot(neigh, wn_ref[...],
                            preferred_element_type=jnp.float32)
        out = out + b_ref[...]
        if apply_relu:
            out = jnp.maximum(out, 0.0)
        o_ref[...] = out.astype(o_ref.dtype)


def _sage_layer(a_mask, x, inv_deg, w_self, w_neigh, b, *, apply_relu,
                block_m, block_k, out_dtype):
    """One tiled SAGEConv layer over padded inputs (shapes already multiples)."""
    n_pad = a_mask.shape[0]
    f_pad = x.shape[1]
    h_pad = w_self.shape[1]
    assert n_pad % block_m == 0 and n_pad % block_k == 0
    grid = (n_pad // block_m, n_pad // block_k)

    kernel = functools.partial(_sage_layer_kernel, apply_relu=apply_relu)

    a_bytes = a_mask.dtype.itemsize
    x_bytes = x.dtype.itemsize
    w_bytes = w_self.dtype.itemsize
    o_bytes = jnp.dtype(out_dtype).itemsize

    # Double-buffered pipelined tiles + resident weights + accumulator scratch
    # (+ one f32 temp for the mask up-cast inside the dot).
    vmem_bytes = (
        2 * block_m * block_k * a_bytes            # A-mask tile
        + block_m * block_k * 4                    # f32 up-cast temp
        + 2 * block_k * f_pad * x_bytes            # X[k] (aggregation operand)
        + 2 * block_m * f_pad * x_bytes            # X[i] (self rows)
        + 2 * block_m * LANE * 4                   # inv_deg column (lane-padded)
        + 2 * 2 * f_pad * h_pad * w_bytes          # W_self, W_neigh
        + 2 * 8 * h_pad * 4                        # bias (vreg-padded)
        + 2 * block_m * h_pad * o_bytes            # output tile
        + block_m * f_pad * 4)                     # accumulator scratch
    # Tie the scoped-VMEM request to actual tile bytes (+50% headroom), floor
    # 16 MiB, cap 48 MiB so there is slack under v7x's 64 MiB physical VMEM.
    vmem_limit = int(min(max(int(vmem_bytes * 1.5), 16 * 1024 * 1024),
                         48 * 1024 * 1024))

    flops = 2 * n_pad * n_pad * f_pad + 2 * 2 * n_pad * f_pad * h_pad
    bytes_accessed = int(
        n_pad * n_pad * a_bytes                    # A mask, streamed once
        + grid[0] * n_pad * f_pad * x_bytes        # X[k] re-streamed per row tile
        + n_pad * f_pad * x_bytes                  # X[i] self rows (once)
        + n_pad * 4                                # inv_deg
        + 2 * f_pad * h_pad * w_bytes + h_pad * 4  # weights + bias
        + n_pad * h_pad * o_bytes)                 # output
    cost = pl.CostEstimate(flops=int(flops), transcendentals=0,
                           bytes_accessed=bytes_accessed)

    return pl.pallas_call(
        kernel,
        out_shape=jax.ShapeDtypeStruct((n_pad, h_pad), out_dtype),
        grid_spec=pltpu.PrefetchScalarGridSpec(
            num_scalar_prefetch=0,
            grid=grid,
            in_specs=[
                pl.BlockSpec((block_m, block_k), lambda i, k: (i, k)),  # A mask
                pl.BlockSpec((block_k, f_pad), lambda i, k: (k, 0)),    # X[k]
                pl.BlockSpec((block_m, f_pad), lambda i, k: (i, 0)),    # X[i]
                pl.BlockSpec((block_m, 1), lambda i, k: (i, 0)),        # 1/in_deg
                pl.BlockSpec((f_pad, h_pad), lambda i, k: (0, 0)),      # W_self
                pl.BlockSpec((f_pad, h_pad), lambda i, k: (0, 0)),      # W_neigh
                pl.BlockSpec((1, h_pad), lambda i, k: (0, 0)),          # bias
            ],
            out_specs=pl.BlockSpec((block_m, h_pad), lambda i, k: (i, 0)),
            scratch_shapes=[pltpu.VMEM((block_m, f_pad), jnp.float32)],
        ),
        compiler_params=pltpu.CompilerParams(
            dimension_semantics=("parallel", "arbitrary"),
            vmem_limit_bytes=vmem_limit,
        ),
        cost_estimate=cost,
    )(a_mask, x, x, inv_deg, w_self, w_neigh, b)


def graphsage_forward(adj, x, ws1, wn1, b1, ws2, wn2, b2, *,
                      block_m=512, block_k=512,
                      x_dtype=jnp.float32, a_dtype=jnp.bfloat16):
    """conv2(relu(conv1(x))) with DGL-style 'mean' aggregation.

    adj[i, j] = 1.0 iff there is an edge j -> i (node i aggregates from j).
    The adjacency is carried as an exact 0/1 mask in `a_dtype` (bf16 default;
    int8 on v5e/v6e or fp8 on v7x shrink the dominant N^2 stream further);
    the 1/in_deg mean scale is applied in f32 inside the kernel.
    """
    n, f_in = x.shape
    h_feats = ws1.shape[1]

    # ---- tile selection --------------------------------------------------
    n_pad128 = _round_up(n, LANE)
    block_m = max(LANE, min(block_m, n_pad128) // LANE * LANE)
    # Keep >= 2 row tiles where possible so the "parallel" row axis can be
    # split across megacore TensorCores (v7x has 2 TCs per chip).
    while block_m > LANE and _round_up(n, block_m) // block_m < 2:
        block_m -= LANE
    n_pad = _round_up(n, block_m)
    # Largest multiple of 128 <= requested block_k that divides n_pad exactly
    # (avoids lcm over-padding of the N^2 adjacency).
    q = n_pad // LANE
    bk_units = max(1, min(block_k // LANE, q))
    while q % bk_units != 0:
        bk_units -= 1
    block_k = bk_units * LANE

    f_pad = _round_up(f_in, LANE)
    h_pad = _round_up(h_feats, LANE)

    # ---- host-side padding / dtype prep -----------------------------------
    adj_f32 = adj.astype(jnp.float32)
    mask = jnp.zeros((n_pad, n_pad), a_dtype).at[:n, :n].set(
        (adj_f32 > 0).astype(a_dtype))                 # 0/1 values: exact in bf16
    in_deg = adj_f32.sum(axis=1, keepdims=True)
    inv = jnp.where(in_deg > 0, 1.0 / jnp.maximum(in_deg, 1.0), 0.0)
    inv_deg = jnp.zeros((n_pad, 1), jnp.float32).at[:n, :].set(inv)

    x_p = jnp.zeros((n_pad, f_pad), x_dtype).at[:n, :f_in].set(x.astype(x_dtype))

    def pad_w(w, fi, fo):
        return jnp.zeros((fi, fo), jnp.float32).at[:w.shape[0], :w.shape[1]].set(
            w.astype(jnp.float32))

    ws1_p, wn1_p = pad_w(ws1, f_pad, h_pad), pad_w(wn1, f_pad, h_pad)
    ws2_p, wn2_p = pad_w(ws2, h_pad, h_pad), pad_w(wn2, h_pad, h_pad)
    b1_p = jnp.zeros((1, h_pad), jnp.float32).at[:, :h_feats].set(
        b1.astype(jnp.float32).reshape(1, -1))
    b2_p = jnp.zeros((1, h_pad), jnp.float32).at[:, :h_feats].set(
        b2.astype(jnp.float32).reshape(1, -1))

    # NOTE: padded rows of `h` equal relu(b1), not zero.  That is harmless:
    # inv_deg is 0 for padded rows and the padded COLUMNS of `mask` are 0, so
    # real rows never aggregate padded garbage and the final slice drops the
    # padded rows.  Layer-1 output is emitted directly in x_dtype (no extra
    # XLA cast pass over the (N, H) intermediate).
    h = _sage_layer(mask, x_p, inv_deg, ws1_p, wn1_p, b1_p, apply_relu=True,
                    block_m=block_m, block_k=block_k, out_dtype=x_dtype)
    out = _sage_layer(mask, h, inv_deg, ws2_p, wn2_p, b2_p, apply_relu=False,
                      block_m=block_m, block_k=block_k, out_dtype=jnp.float32)
    return out[:n, :h_feats]


def build_adjacency(key, num_nodes, p=0.1):
    # Random directed graph; adj[i, j] = 1 means edge j -> i.
    return jax.random.bernoulli(key, p=p,
                                shape=(num_nodes, num_nodes)).astype(jnp.float32)


if __name__ == "__main__":
    # Small shapes consistent with the module: N nodes, in_feats -> h_feats.
    # N is deliberately NOT a multiple of 128 to exercise the padding path and
    # the adaptive tile selection (ends up block_m=128, block_k=256, grid (2,1)).
    N = 200
    in_feats = 16
    h_feats = 32

    key = jax.random.PRNGKey(0)
    k_adj, k_x, k1, k2, k3, k4, k5, k6 = jax.random.split(key, 8)

    adj = build_adjacency(k_adj, N, p=0.1)
    x = jax.random.normal(k_x, (N, in_feats), dtype=jnp.float32)

    # Deterministic parameter init (SAGEConv: fc_self has bias, fc_neigh none).
    def init_w(k, fan_in, fan_out):
        return (jax.random.normal(k, (fan_in, fan_out), dtype=jnp.float32)
                / jnp.sqrt(jnp.float32(fan_in)))

    ws1 = init_w(k1, in_feats, h_feats)         # conv1.fc_self.weight^T
    wn1 = init_w(k2, in_feats, h_feats)         # conv1.fc_neigh.weight^T
    b1 = jax.random.normal(k3, (1, h_feats), dtype=jnp.float32) * 0.01

    ws2 = init_w(k4, h_feats, h_feats)          # conv2.fc_self.weight^T
    wn2 = init_w(k5, h_feats, h_feats)          # conv2.fc_neigh.weight^T
    b2 = jax.random.normal(k6, (1, h_feats), dtype=jnp.float32) * 0.01

    out = graphsage_forward(adj, x, ws1, wn1, b1, ws2, wn2, b2)
    out = jax.block_until_ready(out)

    # Plain-JAX reference check (same math, outside Pallas).
    in_deg = adj.sum(axis=1, keepdims=True)
    inv = jnp.where(in_deg > 0, 1.0 / jnp.maximum(in_deg, 1.0), 0.0)
    a_norm = adj * inv
    neigh1 = a_norm @ x
    h_ref = jnp.maximum(x @ ws1 + neigh1 @ wn1 + b1, 0.0)
    ref = h_ref @ ws2 + (a_norm @ h_ref) @ wn2 + b2

    assert out.shape == (N, h_feats)
    max_err = float(jnp.max(jnp.abs(out - ref)))
    assert jnp.allclose(out, ref, atol=2e-3, rtol=2e-3), max_err

    print("KERNEL_OK")
</pallas_src>

<mosaic_0001>
module attributes {stable_mosaic.version = 11 : i64} {
  func.func @_sage_layer_kernel(%arg0: i32, %arg1: i32, %arg2: memref<128x256xbf16, #tpu.memory_space<vmem>>, %arg3: memref<256x128xf32, #tpu.memory_space<vmem>>, %arg4: memref<128x128xf32, #tpu.memory_space<vmem>>, %arg5: memref<128x1xf32, #tpu.memory_space<vmem>>, %arg6: memref<128x128xf32, #tpu.memory_space<vmem>>, %arg7: memref<128x128xf32, #tpu.memory_space<vmem>>, %arg8: memref<1x128xf32, #tpu.memory_space<vmem>>, %arg9: memref<128x128xf32, #tpu.memory_space<vmem>>, %arg10: memref<128x128xf32, #tpu.memory_space<vmem>>) attributes {dimension_semantics = [#tpu.dimension_semantics<parallel>, #tpu.dimension_semantics<arbitrary>], iteration_bounds = array<i64: 2, 1>, scalar_prefetch = 0 : i64, scratch_operands = 1 : i64, tpu.core_type = #tpu.core_type<tc>, window_params = [{transform_indices = @transform_0, window_bounds = array<i64: 128, 256>}, {transform_indices = @transform_1, window_bounds = array<i64: 256, 128>}, {transform_indices = @transform_2, window_bounds = array<i64: 128, 128>}, {transform_indices = @transform_3, window_bounds = array<i64: 128, 1>}, {pipeline_mode = #tpu.pipeline_mode<synchronous>, transform_indices = @transform_4, window_bounds = array<i64: 128, 128>}, {pipeline_mode = #tpu.pipeline_mode<synchronous>, transform_indices = @transform_5, window_bounds = array<i64: 128, 128>}, {pipeline_mode = #tpu.pipeline_mode<synchronous>, transform_indices = @transform_6, window_bounds = array<i64: 1, 128>}, {transform_indices = @transform_7, window_bounds = array<i64: 128, 128>}]} {
    %c0_i32 = arith.constant 0 : i32
    %0 = arith.cmpi eq, %arg1, %c0_i32 : i32
    %1 = arith.extui %0 : i1 to i32
    %c0_i32_0 = arith.constant 0 : i32
    %2 = arith.cmpi ne, %1, %c0_i32_0 : i32
    scf.if %2 {
      %cst_10 = arith.constant 0.000000e+00 : f32
      %13 = vector.broadcast %cst_10 : f32 to vector<128x128xf32>
      %c0_11 = arith.constant 0 : index
      %c0_12 = arith.constant 0 : index
      %14 = vector.load %arg10[%c0_11, %c0_12] : memref<128x128xf32, #tpu.memory_space<vmem>>, vector<128x128xf32>
      tpu.vector_store %arg10[%c0_11, %c0_12], %13 {strides = array<i32>} : memref<128x128xf32, #tpu.memory_space<vmem>>, vector<128x128xf32>,
    } else {
    }
    %c0 = arith.constant 0 : index
    %c0_1 = arith.constant 0 : index
    %3 = vector.load %arg10[%c0, %c0_1] : memref<128x128xf32, #tpu.memory_space<vmem>>, vector<128x128xf32>
    %c0_2 = arith.constant 0 : index
    %c0_3 = arith.constant 0 : index
    %4 = vector.load %arg2[%c0_2, %c0_3] : memref<128x256xbf16, #tpu.memory_space<vmem>>, vector<128x256xbf16>
    %5 = arith.extf %4 : vector<128x256xbf16> to vector<128x256xf32>
    %c0_4 = arith.constant 0 : index
    %c0_5 = arith.constant 0 : index
    %6 = vector.load %arg3[%c0_4, %c0_5] : memref<256x128xf32, #tpu.memory_space<vmem>>, vector<256x128xf32>
    %cst = arith.constant dense<0.000000e+00> : vector<128x128xf32>
    %7 = tpu.matmul %5, %6, %cst {dimension_numbers = #tpu.dot_dimension_numbers<[1], [0], [0], [1], [0, 0, 1, 1], [], []>} : vector<128x256xf32>, vector<256x128xf32>, vector<128x128xf32> -> vector<128x128xf32>
    %8 = arith.addf %3, %7 : vector<128x128xf32>
    %c0_6 = arith.constant 0 : index
    %c0_7 = arith.constant 0 : index
    %9 = vector.load %arg10[%c0_6, %c0_7] : memref<128x128xf32, #tpu.memory_space<vmem>>, vector<128x128xf32>
    tpu.vector_store %arg10[%c0_6, %c0_7], %8 {strides = array<i32>} : memref<128x128xf32, #tpu.memory_space<vmem>>, vector<128x128xf32>,
    %c0_i32_8 = arith.constant 0 : i32
    %10 = arith.cmpi eq, %arg1, %c0_i32_8 : i32
    %11 = arith.extui %10 : i1 to i32
    %c0_i32_9 = arith.constant 0 : i32
    %12 = arith.cmpi ne, %11, %c0_i32_9 : i32
    scf.if %12 {
      %c0_10 = arith.constant 0 : index
      %c0_11 = arith.constant 0 : index
      %13 = vector.load %arg10[%c0_10, %c0_11] : memref<128x128xf32, #tpu.memory_space<vmem>>, vector<128x128xf32>
      %c0_12 = arith.constant 0 : index
      %c0_13 = arith.constant 0 : index
      %14 = vector.load %arg5[%c0_12, %c0_13] : memref<128x1xf32, #tpu.memory_space<vmem>>, vector<128x1xf32>
      %15 = vector.broadcast %14 : vector<128x1xf32> to vector<128x128xf32>
      %16 = arith.mulf %13, %15 : vector<128x128xf32>
      %c0_14 = arith.constant 0 : index
      %c0_15 = arith.constant 0 : index
      %17 = vector.load %arg4[%c0_14, %c0_15] : memref<128x128xf32, #tpu.memory_space<vmem>>, vector<128x128xf32>
      %c0_16 = arith.constant 0 : index
      %c0_17 = arith.constant 0 : index
      %18 = vector.load %arg6[%c0_16, %c0_17] : memref<128x128xf32, #tpu.memory_space<vmem>>, vector<128x128xf32>
      %cst_18 = arith.constant dense<0.000000e+00> : vector<128x128xf32>
      %19 = tpu.matmul %17, %18, %cst_18 {dimension_numbers = #tpu.dot_dimension_numbers<[1], [0], [0], [1], [0, 0, 1, 1], [], []>} : vector<128x128xf32>, vector<128x128xf32>, vector<128x128xf32> -> vector<128x128xf32>
      %c0_19 = arith.constant 0 : index
      %c0_20 = arith.constant 0 : index
      %20 = vector.load %arg7[%c0_19, %c0_20] : memref<128x128xf32, #tpu.memory_space<vmem>>, vector<128x128xf32>
      %cst_21 = arith.constant dense<0.000000e+00> : vector<128x128xf32>
      %21 = tpu.matmul %16, %20, %cst_21 {dimension_numbers = #tpu.dot_dimension_numbers<[1], [0], [0], [1], [0, 0, 1, 1], [], []>} : vector<128x128xf32>, vector<128x128xf32>, vector<128x128xf32> -> vector<128x128xf32>
      %22 = arith.addf %19, %21 : vector<128x128xf32>
      %c0_22 = arith.constant 0 : index
      %c0_23 = arith.constant 0 : index
      %23 = vector.load %arg8[%c0_22, %c0_23] : memref<1x128xf32, #tpu.memory_space<vmem>>, vector<1x128xf32>
      %24 = vector.broadcast %23 : vector<1x128xf32> to vector<128x128xf32>
      %25 = arith.addf %22, %24 : vector<128x128xf32>
      %cst_24 = arith.constant 0.000000e+00 : f32
      %26 = vector.broadcast %cst_24 : f32 to vector<128x128xf32>
      %27 = arith.maximumf %25, %26 : vector<128x128xf32>
      %c0_25 = arith.constant 0 : index
      %c0_26 = arith.constant 0 : index
      %28 = vector.load %arg9[%c0_25, %c0_26] : memref<128x128xf32, #tpu.memory_space<vmem>>, vector<128x128xf32>
      tpu.vector_store %arg9[%c0_25, %c0_26], %27 {strides = array<i32>} : memref<128x128xf32, #tpu.memory_space<vmem>>, vector<128x128xf32>,
    } else {
    }
    return
  }
  func.func @transform_0(%arg0: i32, %arg1: i32) -> (i32, i32) {
    %c0_i32 = arith.constant 0 : i32
    return %arg0, %arg1 : i32, i32
  }
  func.func @transform_1(%arg0: i32, %arg1: i32) -> (i32, i32) {
    %c0_i32 = arith.constant 0 : i32
    %c0_i32_0 = arith.constant 0 : i32
    return %arg1, %c0_i32 : i32, i32
  }
  func.func @transform_2(%arg0: i32, %arg1: i32) -> (i32, i32) {
    %c0_i32 = arith.constant 0 : i32
    %c0_i32_0 = arith.constant 0 : i32
    return %arg0, %c0_i32 : i32, i32
  }
  func.func @transform_3(%arg0: i32, %arg1: i32) -> (i32, i32) {
    %c0_i32 = arith.constant 0 : i32
    %c0_i32_0 = arith.constant 0 : i32
    return %arg0, %c0_i32 : i32, i32
  }
  func.func @transform_4(%arg0: i32, %arg1: i32) -> (i32, i32) {
    %c0_i32 = arith.constant 0 : i32
    %c0_i32_0 = arith.constant 0 : i32
    %c0_i32_1 = arith.constant 0 : i32
    return %c0_i32, %c0_i32_0 : i32, i32
  }
  func.func @transform_5(%arg0: i32, %arg1: i32) -> (i32, i32) {
    %c0_i32 = arith.constant 0 : i32
    %c0_i32_0 = arith.constant 0 : i32
    %c0_i32_1 = arith.constant 0 : i32
    return %c0_i32, %c0_i32_0 : i32, i32
  }
  func.func @transform_6(%arg0: i32, %arg1: i32) -> (i32, i32) {
    %c0_i32 = arith.constant 0 : i32
    %c0_i32_0 = arith.constant 0 : i32
    %c0_i32_1 = arith.constant 0 : i32
    return %c0_i32, %c0_i32_0 : i32, i32
  }
  func.func @transform_7(%arg0: i32, %arg1: i32) -> (i32, i32) {
    %c0_i32 = arith.constant 0 : i32
    %c0_i32_0 = arith.constant 0 : i32
    return %arg0, %c0_i32 : i32, i32
  }
}

</mosaic_0001>

<bundles_post_ra>
// kernel: tpu_custom_call.1
= control target key start
LH: loop header
LB: loop body
LE: loop exit
PB: predicated region body
PF: predicated region fallthrough
CT: control target
= control target key end

     0   :  { %s1923_s0 = inlined_call_operand.vmem [shape: bf16[256,256], index: 0, kind: input, shape index: {}]   ;;  %s1924_s1 = inlined_call_operand.hbm [shape: f32[256,128], index: 1, kind: input, shape index: {}]   ;;  %s1925_s2 = inlined_call_operand.hbm [shape: f32[256,128], index: 2, kind: input, shape index: {}]   ;;  %s1926_s3 = inlined_call_operand.vmem [shape: f32[256,1], index: 3, kind: input, shape index: {}]   ;;  %s1927_s4 = inlined_call_operand.hbm [shape: f32[128,128], index: 4, kind: input, shape index: {}]   ;;  %s1928_s5 = inlined_call_operand.hbm [shape: f32[128,128], index: 5, kind: input, shape index: {}]   ;;  %s1929_s6 = inlined_call_operand.vmem [shape: f32[1,128], index: 6, kind: input, shape index: {}]   ;;  %s1930_s7 = inlined_call_operand.hbm [shape: f32[256,128], index: 7, kind: output, shape index: {}]  }
   0x1   :  { %1935 = sst [smem:[#allocation19_spill]] %s1924_s1 }
   0x2   :  { %1936 = sst [smem:[#allocation20_spill]] %s1927_s4 }
   0x3   :  { %1937 = sst [smem:[#allocation21_spill]] %s1928_s5 }
   0x4   :  { %12 = vsyncpa [#allocation4], 0 }
   0x5   :  { %13 = vsyncpa [#allocation7], 0 }
   0x6   :  { %15 = vsyncpa [#allocation7 + $0x1], 0 }
   0x7   :  { %16 = vsyncpa [#allocation10], 0 }
   0x8   :  { %17 = vsyncpa [#allocation5], 0 }
   0x9   :  { %19 = vsyncpa [#allocation5 + $0x1], 0  ;;  %s1629_s24 = smov 0   ;;  %s1631_s25 = smov 0  }
   0xa   :  { %s1633_s26 = smov 0   ;;  %s1635_s27 = smov 0  }
   0xb   :  { %s1637_s28 = smov 0   ;;  %s1639_s29 = smov 0  }
   0xc LB: > { %s1660_s30 = sadd.s32 4294967295, %s1579_s29   ;;  %s1235_s8 = sadd.s32 4294967294, %s1579_s29   ;;  %s1579_s29 = sphi %s1639_s29, %s25_s29   ;;  %s1575_s28 = sphi %s1637_s28, %s1957_s28   ;;  %s1571_s27 = sphi %s1635_s27, %s1956_s27   ;;  %s1567_s26 = sphi %s1633_s26, %s1955_s26   ;;  %s1563_s25 = sphi %s1631_s25, %s1954_s25   ;;  %s1559_s24 = sphi %s1629_s24, %s1953_s24  }
   0xd   : > { %p111_p0 = scmp.ne.s32.totalorder %s1563_s25, %s1559_s24  ;;  %p112_p1 = scmp.eq.s32.totalorder %s1660_s30, 0 }
   0xe   : > { %p224_p2 = scmp.eq.s32.totalorder %s1660_s30, 1  ;;  %p230_p3 = scmp.eq.s32.totalorder %s1235_s8, 1 }
   0xf   : > { %p1669_p4 = por %p112_p1, %p111_p0  ;;  %p1236_p5 = scmp.ge.s32.totalorder %s1579_s29, 1 }
  0x10   : > { %p1674_p6 = por %p230_p3, %p111_p0  ;;  %p237_p7 = scmp.lt.s32.totalorder %s1579_s29, 3 }
  0x11   : > { %s1942_s4 = sld [smem:[#allocation20_spill]]  ;;  %s1581_s15 = smov [#allocation8]  }
  0x12   : > { %s1939_s10 = scalar_select %p1674_p6, 1, 0 }
  0x13   : > { %p1679_p8 = pnand %p1236_p5, %p237_p7  ;;  %s267_s16 = sshll.u32 %s1581_s15, 4  ;;  %s268_s16 = int_to_ptr.vmem [resolvable:$true] %s267_s16 }
  0x14   : > { %1940 = sst [smem:[#allocation17_spill]] %s1939_s10  ;;  %p1240_p10 = scmp.ge.s32.totalorder %s1579_s29, 2 }
  0x15   : > { %p1279_p9 = pneg %p1679_p8  ;;  %s1944_s1 = sld [smem:[#allocation19_spill]] }
  0x16   : > { %s1931_s21 = smov 128   ;;  %s1932_s22 = smov 8  }
  0x17   : > { %s265_s14 = sshll.u32 %s1942_s4, 4  ;;  %p1691_p11 = pnand %p1279_p9, %p112_p1  ;;  %s266_s14 = int_to_ptr.hbm [resolvable:$true] %s265_s14 }
  0x18   : > { %s1584_s23 = smov [#allocation3]   ;;  %s1945_s5 = sld [smem:[#allocation21_spill]] }
  0x19   : > { %1285 = dma.hbm_to_vmem [thread:$0]  (!%p1691_p11), %s266_s14, 2048, %s268_s16, [#allocation7], %s1931_s21, %s1931_s21, %s1932_s22  }
  0x1a   : > { %s253_s8 = sshll.u32 %s1584_s23, 4  ;;  %s1585_s14 = smov [#allocation9]   ;;  %s254_s8 = int_to_ptr.vmem [resolvable:$true] %s253_s8 }
  0x1b   : > { %s251_s20 = sshll.u32 %s1944_s1, 4  ;;  %s281_s16 = sshll.u32 %s1585_s14, 4  ;;  %s252_s20 = int_to_ptr.hbm [resolvable:$true] %s251_s20  ;;  %s282_s16 = int_to_ptr.vmem [resolvable:$true] %s281_s16 }
  0x1c   : > { %1282 = dma.hbm_to_vmem [thread:$0]  (!%p1691_p11), %s252_s20, 4096, %s254_s8, [#allocation4], %s1931_s21, %s1931_s21, %s1932_s22  }
  0x1d   : > { %s37_s18 = sadd.s32 1, %s1575_s28  ;;  %p105_p13 = scmp.ne.s32.totalorder %s1567_s26, %s1563_s25 }
  0x1e   : > { %s279_s15 = sshll.u32 %s1945_s5, 4  ;;  %p39_p12 = scmp.ge.s32.totalorder %s37_s18, 2  ;;  %s280_s15 = int_to_ptr.hbm [resolvable:$true] %s279_s15 }
  0x1f   : > { %1288 = dma.hbm_to_vmem [thread:$0]  (!%p1691_p11), %s280_s15, 2048, %s282_s16, [#allocation10], %s1931_s21, %s1931_s21, %s1932_s22  }
  0x20   : > { %p106_p0 = scmp.eq.s32.totalorder %s1579_s29, 0  ;;  %s1959_s18 = smov (%p39_p12, %s37_s18), 0 }
  0x21   : > { %1946 = sst [smem:[#allocation18_spill]] %s1959_s18  ;;  %s98_s19 = sadd.s32 1, %s1567_s26 }
  0x22   : > { %p1725_p3 = por %p224_p2, %p105_p13  ;;  %s95_s23 = ssub.s32 %s1575_s28, %s1959_s18 }
  0x23   : > { %p1731_p5 = por %p106_p0, %p105_p13  ;;  %p96_p7 = scmp.eq.s32.totalorder %s95_s23, 0 }
  0x24   : > { %p1300_p9 = scmp.lt.s32.totalorder %s1579_s29, 2  ;;  %s313_s8 = sand.u32 1, %s1579_s29  }
  0x25   : > { %s315_s12 = sand.u32 1, %s1567_s26   ;;  %s1260_s14 = sshll.u32 %s1575_s28, 7 }
  0x26   : > { %s1739_s13 = scalar_select %p96_p7, %s1567_s26, %s98_s19  }
  0x27   : > { %s1241_s15 = sshll.u32 %s315_s12, 7  ;;  %s322_s22 = scalar_lea.hbm %s1925_s2, %s1260_s14 }
  0x28   : > { %s323_s1 = sshll.u32 %s322_s22, 4  ;;  %s317_s4 = scalar_lea.vmem [#allocation6], %s1241_s15  ;;  %s324_s1 = int_to_ptr.hbm [resolvable:$true] %s323_s1 }
  0x29   : > { %s325_s5 = sshll.u32 %s317_s4, 4  ;;  %p1290_p2 = pnand %p1300_p9, %p1731_p5  ;;  %s326_s5 = int_to_ptr.vmem [resolvable:$true] %s325_s5 }
  0x2a   : > { %s314_s18 = scalar_lea.sflag [#allocation7], %s313_s8  ;;  %s1949_s23 = smov 8  }
  0x2b   : > { %s1950_s10 = smov 128   ;;  %346 = sbr.rel (%p1679_p8) target bundleno = 483 (0x1e3), region = 48 }
  0x2c   : > { %1292 = dma.hbm_to_vmem [thread:$0]  (!%p1290_p2), %s324_s1, 2048, %s326_s5, %s314_s18, %s1950_s10, %s1950_s10, %s1949_s23  }
  0x30   : > { %1538 = dma.done.wait (%p112_p1), [#allocation4], 4096  }
  0x31   : > { %1540 = vsyncadd (%p112_p1), [#allocation4], 4294963200  ;;  %s353_s4 = sand.u32 1, %s1660_s30   ;;  %s355_s21 = sand.u32 1, %s1563_s25  }
  0x32   : > { %s1760_s22 = sshll.u32 %s355_s21, 7  ;;  %s354_s1 = scalar_lea.sflag [#allocation7], %s353_s4 }
  0x33   : > { %s1763_s5 = scalar_lea.vmem [#allocation6], %s1760_s22 }
  0x34   : > { %1542 = dma.done.wait (%p1669_p4), %s354_s1, 2048  }
  0x35   : > { %1544 = vsyncadd (%p1669_p4), %s354_s1, 4294965248 }
  0x36   : > { %1546 = dma.done.wait (%p112_p1), [#allocation7], 2048  }
  0x37   : > { %1548 = vsyncadd (%p112_p1), [#allocation7], 4294965248 }
  0x38   : > { %1550 = dma.done.wait (%p112_p1), [#allocation10], 2048  }
  0x39   : > { %1552 = vsyncadd (%p112_p1), [#allocation10], 4294965248  ;;  %s1250_s10 = sshll.u32 %s1571_s27, 4  ;;  %v1586_v0 = vmov 0   ;;  %v534_v1 = vld [vmem:[#allocation3 + $0x78] sm:$0xff]  ;;  %v533_v3 = vld [vmem:[#allocation3 + $0x70] sm:$0xff] }
  0x3a   : > { %1361 = vset.pattern.permute.xlu0 %v1586_v0  ;;  %p416_p8 = scmp.lt.s32.totalorder %s1250_s10, 31  ;;  %1362 = vset.pattern.permute.xlu1 %v1586_v0  ;;  %v550_v2 = vld [vmem:[#allocation3 + $0xf8] sm:$0xff]  ;;  %v549_v4 = vld [vmem:[#allocation3 + $0xf0] sm:$0xff]  ;;  %v532_v6 = vld [vmem:[#allocation3 + $0x68] sm:$0xff]  ;;  %s1850_s14 = scalar_lea.vmem [#allocation11], %s1760_s22 }
  0x3b   : > { %1363 = vset.pattern.permute.xlu2 %v1586_v0  ;;  %551 = vmatpush.msra.mxu0 %v534_v1  ;;  %v548_v7 = vld [vmem:[#allocation3 + $0xe8] sm:$0xff]  ;;  %v531_v8 = vld [vmem:[#allocation3 + $0x60] sm:$0xff]  ;;  %v530_v10 = vld [vmem:[#allocation3 + $0x58] sm:$0xff]  ;;  %s1262_s16 = sshll.u32 %s1571_s27, 7  ;;  %s1087_s1 = sshll.u32 %s1850_s14, 4  ;;  %s1088_s1 = int_to_ptr.vmem [resolvable:$true] %s1087_s1 }
  0x3c   : > { %s1961_s10 = smov (!%p416_p8, %s1250_s10), 31  ;;  %616 = vmatpush.msra.mxu1 %v550_v2  ;;  %v547_v9 = vld [vmem:[#allocation3 + $0xe0] sm:$0xff]  ;;  %v546_v11 = vld [vmem:[#allocation3 + $0xd8] sm:$0xff]  ;;  %v529_v13 = vld [vmem:[#allocation3 + $0x50] sm:$0xff]  ;;  %s1086_s22 = scalar_lea.hbm %s1930_s7, %s1262_s16 }
  0x3d   : > { %s1261_s9 = sshll.u32 %s1961_s10, 3  ;;  %552 = vmatpush.msra.mxu0 %v533_v3  ;;  %v545_v14 = vld [vmem:[#allocation3 + $0xd0] sm:$0xff]  ;;  %v528_v15 = vld [vmem:[#allocation3 + $0x48] sm:$0xff]  ;;  %v527_v18 = vld [vmem:[#allocation3 + $0x40] sm:$0xff]  ;;  %s1075_s27 = scalar_lea.sflag [#allocation5], %s355_s21 }
  0x3e   : > { %s1786_s19 = scalar_lea.vmem %s1926_s3, %s1261_s9  ;;  %617 = vmatpush.msra.mxu1 %v549_v4  ;;  %v544_v16 = vld [vmem:[#allocation3 + $0xc8] sm:$0xff]  ;;  %v543_v19 = vld [vmem:[#allocation3 + $0xc0] sm:$0xff]  ;;  %v526_v20 = vld [vmem:[#allocation3 + $0x38] sm:$0xff]  ;;  %s1798_s8 = scalar_lea.vmem %s1923_s0, %s1261_s9 }
  0x3f   : > { %v732_v5 = vld [vmem:[%s1786_s19] sm:$0xff]  ;;  %553 = vmatpush.msra.mxu0 %v532_v6  ;;  %v733_v12 = vld [vmem:[%s1786_s19 + $0x8] sm:$0xff]  ;;  %v734_v17 = vld [vmem:[%s1786_s19 + $0x10] sm:$0xff] }
  0x40   : > { %750 = vperm.xlu0 %1361, %v732_v5   ;;  %618 = vmatpush.msra.mxu1 %v548_v7  ;;  %v542_v21 = vld [vmem:[#allocation3 + $0xb8] sm:$0xff]  ;;  %v738_v22 = vld [vmem:[%s1786_s19 + $0x30] sm:$0xff]  ;;  %v524_v26 = vld [vmem:[#allocation3 + $0x28] sm:$0xff] }
  0x41   : > { %554 = vmatpush.msra.mxu0 %v531_v8  ;;  %760 = vperm.xlu1 %1362, %v734_v17   ;;  %v525_v23 = vld [vmem:[#allocation3 + $0x30] sm:$0xff]  ;;  %v735_v25 = vld [vmem:[%s1786_s19 + $0x18] sm:$0xff]  ;;  %v540_v27 = vld [vmem:[#allocation3 + $0xa8] sm:$0xff] }
  0x42   : > { %619 = vmatpush.msra.mxu1 %v547_v9  ;;  %v541_v24 = vld [vmem:[#allocation3 + $0xb0] sm:$0xff]  ;;  %v523_v28 = vld [vmem:[#allocation3 + $0x20] sm:$0xff]  ;;  %v522_v30 = vld [vmem:[#allocation3 + $0x18] sm:$0xff] }
  0x43   : > { %555 = vmatpush.msra.mxu0 %v530_v10  ;;  %v539_v29 = vld [vmem:[#allocation3 + $0xa0] sm:$0xff]  ;;  %v538_v31 = vld [vmem:[#allocation3 + $0x98] sm:$0xff]  ;;  %v741_v32 = vld [vmem:[%s1786_s19 + $0x48] sm:$0xff] }
  0x44   : > { %620 = vmatpush.msra.mxu1 %v546_v11  ;;  %v521_v33 = vld [vmem:[#allocation3 + $0x10] sm:$0xff]  ;;  %v471_v35 = vld [vmem:[%s1798_s8] sm:$0xff]  ;;  %v739_v36 = vld [vmem:[%s1786_s19 + $0x38] sm:$0xff] }
  0x45   : > { %556 = vmatpush.msra.mxu0 %v529_v13  ;;  %v537_v34 = vld [vmem:[#allocation3 + $0x90] sm:$0xff]  ;;  %v520_v37 = vld [vmem:[#allocation3 + $0x8] sm:$0xff]  ;;  %v519_v39 = vld [vmem:[#allocation3] sm:$0xff]  ;;  %v487_v41 = vunpack.c.l.bf16 %v471_v35  ;;  %v488_v42 = vunpack.c.h.bf16 %v471_v35 }
  0x46   : > { %621 = vmatpush.msra.mxu1 %v545_v14  ;;  %v536_v38 = vld [vmem:[#allocation3 + $0x88] sm:$0xff]  ;;  %v535_v40 = vld [vmem:[#allocation3 + $0x80] sm:$0xff]  ;;  %v742_v46 = vld [vmem:[%s1786_s19 + $0x50] sm:$0xff] }
  0x47   : > { %557 = vmatpush.msra.mxu0 %v528_v15  ;;  %v744_v43 = vld [vmem:[%s1786_s19 + $0x60] sm:$0xff]  ;;  %v472_v45 = vld [vmem:[%s1798_s8 + $0x8] sm:$0xff]  ;;  %v747_v49 = vld [vmem:[%s1786_s19 + $0x78] sm:$0xff] }
  0x48   : > { %755 = vperm.xlu0 %1361, %v733_v12   ;;  %622 = vmatpush.msra.mxu1 %v544_v16  ;;  %v736_v44 = vld [vmem:[%s1786_s19 + $0x20] sm:$0xff]  ;;  %v489_v47 = vunpack.c.l.bf16 %v472_v45  ;;  %v490_v48 = vunpack.c.h.bf16 %v472_v45  ;;  %v737_v50 = vld [vmem:[%s1786_s19 + $0x28] sm:$0xff]  ;;  %v473_v51 = vld [vmem:[%s1798_s8 + $0x10] sm:$0xff] }
  0x49   : > { %558 = vmatpush.msra.mxu0 %v527_v18  ;;  %765 = vperm.xlu1 %1362, %v735_v25   ;;  %v745_v52 = vld [vmem:[%s1786_s19 + $0x68] sm:$0xff]  ;;  %v491_v53 = vunpack.c.l.bf16 %v473_v51  ;;  %v492_v54 = vunpack.c.h.bf16 %v473_v51  ;;  %v740_v55 = vld [vmem:[%s1786_s19 + $0x40] sm:$0xff]  ;;  %v474_v56 = vld [vmem:[%s1798_s8 + $0x18] sm:$0xff] }
  0x4a   : > { %623 = vmatpush.msra.mxu1 %v543_v19  ;;  %770 = vperm.xlu2 %1363, %v736_v44   ;;  %v493_v57 = vunpack.c.l.bf16 %v474_v56  ;;  %v494_v58 = vunpack.c.h.bf16 %v474_v56  ;;  %v743_v59 = vld [vmem:[%s1786_s19 + $0x58] sm:$0xff]  ;;  %v475_v60 = vld [vmem:[%s1798_s8 + $0x20] sm:$0xff]  ;;  %v746_v63 = vld [vmem:[%s1786_s19 + $0x70] sm:$0xff]  ;;  %s1505_s19 = scalar_lea.hbm %s1930_s7, 256 }
  0x4b   : > { %559 = vmatpush.msra.mxu0 %v526_v20  ;;  %v495_v61 = vunpack.c.l.bf16 %v475_v60  ;;  %v496_v62 = vunpack.c.h.bf16 %v475_v60  ;;  %v476_v0 = vld [vmem:[%s1798_s8 + $0x28] sm:$0xff]  ;;  %v477_v3 = vld [vmem:[%s1798_s8 + $0x30] sm:$0xff]  ;;  %v478_v6 = vld [vmem:[%s1798_s8 + $0x38] sm:$0xff] }
  0x4c   : > { %624 = vmatpush.msra.mxu1 %v542_v21  ;;  %v497_v1 = vunpack.c.l.bf16 %v476_v0  ;;  %v498_v2 = vunpack.c.h.bf16 %v476_v0  ;;  %v499_v4 = vunpack.c.l.bf16 %v477_v3  ;;  %v500_v5 = vunpack.c.h.bf16 %v477_v3  ;;  %v479_v9 = vld [vmem:[%s1798_s8 + $0x40] sm:$0xff]  ;;  %v891_v12 = vld [vmem:[#allocation9 + $0x78] sm:$0xff]  ;;  %v890_v14 = vld [vmem:[#allocation9 + $0x70] sm:$0xff] }
  0x4d   : > { %560 = vmatpush.msra.mxu0 %v525_v23  ;;  %v501_v7 = vunpack.c.l.bf16 %v478_v6  ;;  %v502_v8 = vunpack.c.h.bf16 %v478_v6  ;;  %v503_v10 = vunpack.c.l.bf16 %v479_v9  ;;  %v504_v11 = vunpack.c.h.bf16 %v479_v9  ;;  %v875_v13 = vld [vmem:[#allocation8 + $0x78] sm:$0xff]  ;;  %v480_v15 = vld [vmem:[%s1798_s8 + $0x48] sm:$0xff]  ;;  %892 = vmatpush.msra.mxu2 %v891_v12  ;;  %v874_v16 = vld [vmem:[#allocation8 + $0x70] sm:$0xff] }
  0x4e   : > { %625 = vmatpush.msra.mxu1 %v541_v24  ;;  %957 = vmatpush.msra.mxu3 %v875_v13  ;;  %v889_v17 = vld [vmem:[#allocation9 + $0x68] sm:$0xff]  ;;  %v505_v19 = vunpack.c.l.bf16 %v480_v15  ;;  %v506_v20 = vunpack.c.h.bf16 %v480_v15  ;;  %v888_v21 = vld [vmem:[#allocation9 + $0x60] sm:$0xff]  ;;  %v887_v23 = vld [vmem:[#allocation9 + $0x58] sm:$0xff] }
  0x4f   : > { %561 = vmatpush.msra.mxu0 %v524_v26  ;;  %v873_v18 = vld [vmem:[#allocation8 + $0x68] sm:$0xff]  ;;  %893 = vmatpush.msra.mxu2 %v890_v14  ;;  %v481_v24 = vld [vmem:[%s1798_s8 + $0x50] sm:$0xff]  ;;  %v871_v25 = vld [vmem:[#allocation8 + $0x58] sm:$0xff] }
  0x50   : > { %780 = vperm.xlu0 %1361, %v738_v22   ;;  %626 = vmatpush.msra.mxu1 %v540_v27  ;;  %v872_v22 = vld [vmem:[#allocation8 + $0x60] sm:$0xff]  ;;  %v886_v26 = vld [vmem:[#allocation9 + $0x50] sm:$0xff]  ;;  %v482_v35 = vld [vmem:[%s1798_s8 + $0x58] sm:$0xff] }
  0x51   : > { %562 = vmatpush.msra.mxu0 %v523_v28  ;;  %785 = vperm.xlu1 %1362, %v739_v36   ;;  %v870_v27 = vld [vmem:[#allocation8 + $0x50] sm:$0xff]  ;;  %v507_v28 = vunpack.c.l.bf16 %v481_v24  ;;  %v867_v36 = vld [vmem:[#allocation8 + $0x38] sm:$0xff]  ;;  %v864_v44 = vld [vmem:[#allocation8 + $0x20] sm:$0xff] }
  0x52   : > { %627 = vmatpush.msra.mxu1 %v539_v29  ;;  %775 = vperm.xlu2 %1363, %v737_v50   ;;  %v508_v29 = vunpack.c.h.bf16 %v481_v24  ;;  %v879_v45 = vld [vmem:[#allocation9 + $0x18] sm:$0xff]  ;;  %v878_v50 = vld [vmem:[#allocation9 + $0x10] sm:$0xff]  ;;  %v484_v56 = vld [vmem:[%s1798_s8 + $0x68] sm:$0xff] }
  0x53   : > { %563 = vmatpush.msra.mxu0 %v522_v30  ;;  %958 = vmatpush.msra.mxu3 %v874_v16  ;;  %v885_v30 = vld [vmem:[#allocation9 + $0x48] sm:$0xff]  ;;  %v862_v51 = vld [vmem:[#allocation8 + $0x10] sm:$0xff]  ;;  %v486_v0 = vld [vmem:[%s1798_s8 + $0x78] sm:$0xff] }
  0x54   : > { %628 = vmatpush.msra.mxu1 %v538_v31  ;;  %894 = vmatpush.msra.mxu2 %v889_v17  ;;  %v869_v31 = vld [vmem:[#allocation8 + $0x48] sm:$0xff]  ;;  %v485_v60 = vld [vmem:[%s1798_s8 + $0x70] sm:$0xff]  ;;  %v518_v3 = vunpack.c.h.bf16 %v486_v0 }
  0x55   : > { %564 = vmatpush.msra.mxu0 %v521_v33  ;;  %959 = vmatpush.msra.mxu3 %v873_v18  ;;  %v868_v33 = vld [vmem:[#allocation8 + $0x40] sm:$0xff]  ;;  %v849_v16 = vld [vmem:[%s1763_s5 + $0x28] sm:$0xff] }
  0x56   : > { %629 = vmatpush.msra.mxu1 %v537_v34  ;;  %895 = vmatpush.msra.mxu2 %v888_v21  ;;  %v883_v34 = vld [vmem:[#allocation9 + $0x38] sm:$0xff] }
  0x57   : > { %565 = vmatpush.msra.mxu0 %v520_v37  ;;  %960 = vmatpush.msra.mxu3 %v872_v22  ;;  %v882_v37 = vld [vmem:[#allocation9 + $0x30] sm:$0xff] }
  0x58   : > { %795 = vperm.xlu0 %1361, %v741_v32   ;;  %630 = vmatpush.msra.mxu1 %v536_v38  ;;  %v884_v32 = vld [vmem:[#allocation9 + $0x40] sm:$0xff]  ;;  %v866_v38 = vld [vmem:[#allocation8 + $0x30] sm:$0xff] }
  0x59   : > { %566 = vmatpush.msra.mxu0 %v519_v39  ;;  %800 = vperm.xlu1 %1362, %v742_v46   ;;  %v509_v39 = vunpack.c.l.bf16 %v482_v35  ;;  %v483_v46 = vld [vmem:[%s1798_s8 + $0x60] sm:$0xff]  ;;  %v850_v22 = vld [vmem:[%s1763_s5 + $0x30] sm:$0xff] }
  0x5a   : > { %631 = vmatpush.msra.mxu1 %v535_v40  ;;  %567 = vmatmul.f32.vlgmr.msra.gmra.mxu0 %v487_v41  ;;  %v510_v40 = vunpack.c.h.bf16 %v482_v35  ;;  %v881_v41 = vld [vmem:[#allocation9 + $0x28] sm:$0xff] }
  0x5b   : > { %632 = vmatmul.f32.vlgmr.msra.gmra.mxu1 %v488_v42  ;;  %790 = vperm.xlu2 %1363, %v740_v55   ;;  %v865_v42 = vld [vmem:[#allocation8 + $0x28] sm:$0xff]  ;;  %v860_v55 = vld [vmem:[#allocation8] sm:$0xff] }
  0x5c   : > { %896 = vmatpush.msra.mxu2 %v887_v23  ;;  %961 = vmatpush.msra.mxu3 %v871_v25 }
  0x5e   : > { %897 = vmatpush.msra.mxu2 %v886_v26  ;;  %962 = vmatpush.msra.mxu3 %v870_v27 }
  0x60   : > { %810 = vperm.xlu0 %1361, %v744_v43   ;;  %898 = vmatpush.msra.mxu2 %v885_v30  ;;  %v880_v43 = vld [vmem:[#allocation9 + $0x20] sm:$0xff] }
  0x61   : > { %815 = vperm.xlu1 %1362, %v745_v52   ;;  %963 = vmatpush.msra.mxu3 %v869_v31  ;;  %v877_v52 = vld [vmem:[#allocation9 + $0x8] sm:$0xff] }
  0x62   : > { %570 = vmatmul.f32.gmra.mxu0 %v489_v47  ;;  %899 = vmatpush.msra.mxu2 %v884_v32  ;;  %v863_v47 = vld [vmem:[#allocation8 + $0x18] sm:$0xff] }
  0x63   : > { %635 = vmatmul.f32.gmra.mxu1 %v490_v48  ;;  %805 = vperm.xlu2 %1363, %v743_v59   ;;  %v511_v48 = vunpack.c.l.bf16 %v483_v46  ;;  %v514_v59 = vunpack.c.h.bf16 %v484_v56 }
  0x64   : > { %964 = vmatpush.msra.mxu3 %v868_v33  ;;  %900 = vmatpush.msra.mxu2 %v883_v34  ;;  %v852_v34 = vld [vmem:[%s1763_s5 + $0x40] sm:$0xff] }
  0x66   : > { %965 = vmatpush.msra.mxu3 %v867_v36  ;;  %901 = vmatpush.msra.mxu2 %v882_v37 }
  0x68   : > { %825 = vperm.xlu0 %1361, %v747_v49   ;;  %966 = vmatpush.msra.mxu3 %v866_v38  ;;  %v512_v49 = vunpack.c.h.bf16 %v483_v46  ;;  %v854_v46 = vld [vmem:[%s1763_s5 + $0x50] sm:$0xff] }
  0x69   : > { %902 = vmatpush.msra.mxu2 %v881_v41 }
  0x6a   : > { %573 = vmatmul.f32.gmra.mxu0 %v491_v53  ;;  %967 = vmatpush.msra.mxu3 %v865_v42  ;;  %v861_v53 = vld [vmem:[#allocation8 + $0x8] sm:$0xff] }
  0x6b   : > { %638 = vmatmul.f32.gmra.mxu1 %v492_v54  ;;  %820 = vperm.xlu2 %1363, %v746_v63   ;;  %v876_v54 = vld [vmem:[#allocation9] sm:$0xff]  ;;  %v516_v63 = vunpack.c.h.bf16 %v485_v60 }
  0x6c   : > { %903 = vmatpush.msra.mxu2 %v880_v43  ;;  %968 = vmatpush.msra.mxu3 %v864_v44 }
  0x6e   : > { %904 = vmatpush.msra.mxu2 %v879_v45  ;;  %969 = vmatpush.msra.mxu3 %v863_v47 }
  0x70   : > { %905 = vmatpush.msra.mxu2 %v878_v50  ;;  %970 = vmatpush.msra.mxu3 %v862_v51 }
  0x72   : > { %576 = vmatmul.f32.gmra.mxu0 %v493_v57  ;;  %906 = vmatpush.msra.mxu2 %v877_v52  ;;  %v844_v57 = vld [vmem:[%s1763_s5] sm:$0xff]  ;;  %v855_v52 = vld [vmem:[%s1763_s5 + $0x58] sm:$0xff] }
  0x73   : > { %641 = vmatmul.f32.gmra.mxu1 %v494_v58  ;;  %971 = vmatpush.msra.mxu3 %v861_v53  ;;  %v513_v58 = vunpack.c.l.bf16 %v484_v56 }
  0x74   : > { %907 = vmatpush.msra.mxu2 %v876_v54 }
  0x75   : > { %972 = vmatpush.msra.mxu3 %v860_v55 }
  0x76   : > { %973 = vmatmul.f32.vlgmr.msra.gmra.mxu3 %v844_v57 }
  0x7a   : > { %579 = vmatmul.f32.gmra.mxu0 %v495_v61  ;;  %v845_v61 = vld [vmem:[%s1763_s5 + $0x8] sm:$0xff] }
  0x7b   : > { %644 = vmatmul.f32.gmra.mxu1 %v496_v62  ;;  %v515_v62 = vunpack.c.l.bf16 %v485_v60 }
  0x7e   : > { %976 = vmatmul.f32.gmra.mxu3 %v845_v61 }
  0x82   : > { %582 = vmatmul.f32.gmra.mxu0 %v497_v1  ;;  %v846_v1 = vld [vmem:[%s1763_s5 + $0x10] sm:$0xff] }
  0x83   : > { %647 = vmatmul.f32.gmra.mxu1 %v498_v2  ;;  %v517_v2 = vunpack.c.l.bf16 %v486_v0  ;;  %v857_v0 = vld [vmem:[%s1763_s5 + $0x68] sm:$0xff] }
  0x86   : > { %979 = vmatmul.f32.gmra.mxu3 %v846_v1 }
  0x8a   : > { %585 = vmatmul.f32.gmra.mxu0 %v499_v4  ;;  %v847_v4 = vld [vmem:[%s1763_s5 + $0x18] sm:$0xff] }
  0x8b   : > { %650 = vmatmul.f32.gmra.mxu1 %v500_v5 }
  0x8e   : > { %982 = vmatmul.f32.gmra.mxu3 %v847_v4 }
  0x92   : > { %588 = vmatmul.f32.gmra.mxu0 %v501_v7 }
  0x93   : > { %653 = vmatmul.f32.gmra.mxu1 %v502_v8 }
  0x9a   : > { %591 = vmatmul.f32.gmra.mxu0 %v503_v10  ;;  %v848_v10 = vld [vmem:[%s1763_s5 + $0x20] sm:$0xff] }
  0x9b   : > { %656 = vmatmul.f32.gmra.mxu1 %v504_v11  ;;  %985 = vmatmul.f32.gmra.mxu3 %v848_v10 }
  0xa2   : > { %594 = vmatmul.f32.gmra.mxu0 %v505_v19 }
  0xa3   : > { %659 = vmatmul.f32.gmra.mxu1 %v506_v20  ;;  %988 = vmatmul.f32.gmra.mxu3 %v849_v16 }
  0xaa   : > { %597 = vmatmul.f32.gmra.mxu0 %v507_v28  ;;  %v851_v28 = vld [vmem:[%s1763_s5 + $0x38] sm:$0xff] }
  0xab   : > { %662 = vmatmul.f32.gmra.mxu1 %v508_v29  ;;  %991 = vmatmul.f32.gmra.mxu3 %v850_v22  ;;  %v771_v29 = vpop.permute.xlu2 %770 }
  0xb2   : > { %600 = vmatmul.f32.gmra.mxu0 %v509_v39  ;;  %v751_v5 = vpop.permute.xlu0 %750 }
  0xb3   : > { %665 = vmatmul.f32.gmra.mxu1 %v510_v40  ;;  %v761_v17 = vpop.permute.xlu1 %760  ;;  %994 = vmatmul.f32.gmra.mxu3 %v851_v28  ;;  %v776_v38 = vpop.permute.xlu2 %775  ;;  %v853_v40 = vld [vmem:[%s1763_s5 + $0x48] sm:$0xff] }
  0xba   : > { %603 = vmatmul.f32.gmra.mxu0 %v511_v48  ;;  %v756_v14 = vpop.permute.xlu0 %755 }
  0xbb   : > { %668 = vmatmul.f32.gmra.mxu1 %v512_v49  ;;  %v766_v26 = vpop.permute.xlu1 %765  ;;  %997 = vmatmul.f32.gmra.mxu3 %v852_v34  ;;  %v791_v56 = vpop.permute.xlu2 %790 }
  0xc2   : > { %606 = vmatmul.f32.gmra.mxu0 %v513_v58  ;;  %v781_v44 = vpop.permute.xlu0 %780  ;;  %v856_v58 = vld [vmem:[%s1763_s5 + $0x60] sm:$0xff] }
  0xc3   : > { %671 = vmatmul.f32.gmra.mxu1 %v514_v59  ;;  %1000 = vmatmul.f32.gmra.mxu3 %v853_v40  ;;  %v786_v50 = vpop.permute.xlu1 %785  ;;  %v806_v10 = vpop.permute.xlu2 %805 }
  0xca   : > { %609 = vmatmul.f32.gmra.mxu0 %v515_v62  ;;  %v796_v62 = vpop.permute.xlu0 %795 }
  0xcb   : > { %674 = vmatmul.f32.gmra.mxu1 %v516_v63  ;;  %1003 = vmatmul.f32.gmra.mxu3 %v854_v46  ;;  %v801_v4 = vpop.permute.xlu1 %800 }
  0xd2   : > { %612 = vmatmul.f32.gmra.mxu0 %v517_v2  ;;  %v811_v16 = vpop.permute.xlu0 %810 }
  0xd3   : > { %677 = vmatmul.f32.gmra.mxu1 %v518_v3  ;;  %1006 = vmatmul.f32.gmra.mxu3 %v855_v52  ;;  %v816_v22 = vpop.permute.xlu1 %815 }
  0xd7   : > { %v568_v6 = vpop.f32.mrf.mxu0 }
  0xd8   : > { %v633_v7 = vpop.f32.mrf.mxu1 }
  0xd9   : > { %v634_v8 = vadd.f32 %v633_v7, %v568_v6  ;;  %v858_v6 = vld [vmem:[%s1763_s5 + $0x70] sm:$0xff] }
  0xdb   : > { %v828_v9 = vmul.f32 %v751_v5, %v634_v8  ;;  %1009 = vmatmul.f32.gmra.mxu3 %v856_v58 }
  0xdd   : > { %908 = vmatmul.f32.vlgmr.msra.gmra.mxu2 %v828_v9 }
  0xdf   : > { %v571_v11 = vpop.f32.mrf.mxu0 }
  0xe0   : > { %v636_v12 = vpop.f32.mrf.mxu1 }
  0xe1   : > { %v637_v13 = vadd.f32 %v636_v12, %v571_v11  ;;  %v859_v12 = vld [vmem:[%s1763_s5 + $0x78] sm:$0xff]  ;;  %s1089_s5 = sshll.u32 %s1086_s22, 4  ;;  %s1090_s5 = int_to_ptr.hbm [resolvable:$true] %s1089_s5 }
  0xe2   : > { %s1499_s10 = sshra.s32 %s1090_s5, 4  ;;  %s1500_s10 = int_to_ptr.hbm [resolvable:$true] %s1499_s10 }
  0xe3   : > { %v829_v15 = vmul.f32 %v756_v14, %v637_v13  ;;  %1012 = vmatmul.f32.gmra.mxu3 %v857_v0  ;;  %s1501_s9 = scalar_lea.hbm %s1500_s10, 128  ;;  %p1506_p12 = scmp.lt.s32.totalorder %s1500_s10, %s1930_s7 }
  0xe4   : > { %p1502_p1 = scmp.ne.s32.totalorder %s1500_s10, %s1501_s9  ;;  %p1507_p13 = scmp.lt.s32.totalorder %s1505_s19, %s1501_s9 }
  0xe5   : > { %911 = vmatmul.f32.gmra.mxu2 %v829_v15 }
  0xe6   : > { %p1503_p4 = pnand %p1502_p1, %p1725_p3  ;;  %p1508_p0 = por %p1507_p13, %p1506_p12 }
  0xe7   : > { %v574_v18 = vpop.f32.mrf.mxu0 }
  0xe8   : > { %v639_v19 = vpop.f32.mrf.mxu1  ;;  %p1504_p11 = pneg %p1503_p4 }
  0xe9   : > { %v640_v20 = vadd.f32 %v639_v19, %v574_v18 }
  0xea   : > { %p1509_p5 = pnand %p1508_p0, %p1504_p11 }
  0xeb   : > { %v830_v21 = vmul.f32 %v761_v17, %v640_v20  ;;  %1015 = vmatmul.f32.gmra.mxu3 %v858_v6 }
  0xed   : > { %914 = vmatmul.f32.gmra.mxu2 %v830_v21 }
  0xef   : > { %v577_v23 = vpop.f32.mrf.mxu0 }
  0xf0   : > { %v642_v24 = vpop.f32.mrf.mxu1 }
  0xf1   : > { %v643_v25 = vadd.f32 %v642_v24, %v577_v23 }
  0xf3   : > { %v831_v27 = vmul.f32 %v766_v26, %v643_v25  ;;  %1018 = vmatmul.f32.gmra.mxu3 %v859_v12 }
  0xf5   : > { %917 = vmatmul.f32.gmra.mxu2 %v831_v27  ;;  %v821_v27 = vpop.permute.xlu2 %820 }
  0xf7   : > { %v580_v30 = vpop.f32.mrf.mxu0 }
  0xf8   : > { %v645_v31 = vpop.f32.mrf.mxu1 }
  0xf9   : > { %v646_v32 = vadd.f32 %v645_v31, %v580_v30  ;;  %v974_v21 = vpop.f32.mrf.mxu3 }
  0xfb   : > { %v832_v33 = vmul.f32 %v771_v29, %v646_v32 }
  0xfd   : > { %920 = vmatmul.f32.gmra.mxu2 %v832_v33  ;;  %v826_v33 = vpop.permute.xlu0 %825 }
  0xff   : > { %v583_v35 = vpop.f32.mrf.mxu0 }
 0x100   : > { %v648_v36 = vpop.f32.mrf.mxu1 }
 0x101   : > { %v649_v37 = vadd.f32 %v648_v36, %v583_v35  ;;  %v977_v28 = vpop.f32.mrf.mxu3 }
 0x103   : > { %v833_v39 = vmul.f32 %v776_v38, %v649_v37  ;;  %v1846_v37 = vld [vmem:[%s1929_s6] ss:$0 sm:$0xff] }
 0x105   : > { %923 = vmatmul.f32.gmra.mxu2 %v833_v39 }
 0x107   : > { %v586_v41 = vpop.f32.mrf.mxu0 }
 0x108   : > { %v651_v42 = vpop.f32.mrf.mxu1 }
 0x109   : > { %v652_v43 = vadd.f32 %v651_v42, %v586_v41  ;;  %v980_v35 = vpop.f32.mrf.mxu3 }
 0x10b   : > { %v834_v45 = vmul.f32 %v781_v44, %v652_v43 }
 0x10d   : > { %926 = vmatmul.f32.gmra.mxu2 %v834_v45 }
 0x10f   : > { %v589_v47 = vpop.f32.mrf.mxu0 }
 0x110   : > { %v654_v48 = vpop.f32.mrf.mxu1 }
 0x111   : > { %v655_v49 = vadd.f32 %v654_v48, %v589_v47  ;;  %v983_v36 = vpop.f32.mrf.mxu3 }
 0x113   : > { %v835_v51 = vmul.f32 %v786_v50, %v655_v49 }
 0x115   : > { %929 = vmatmul.f32.gmra.mxu2 %v835_v51 }
 0x117   : > { %v592_v53 = vpop.f32.mrf.mxu0 }
 0x118   : > { %v657_v54 = vpop.f32.mrf.mxu1 }
 0x119   : > { %v658_v55 = vadd.f32 %v657_v54, %v592_v53 }
 0x11b   : > { %v836_v57 = vmul.f32 %v791_v56, %v658_v55 }
 0x11d   : > { %932 = vmatmul.f32.gmra.mxu2 %v836_v57 }
 0x11e   : > { %v986_v43 = vpop.f32.mrf.mxu3 }
 0x11f   : > { %v595_v59 = vpop.f32.mrf.mxu0 }
 0x120   : > { %v660_v60 = vpop.f32.mrf.mxu1 }
 0x121   : > { %v661_v61 = vadd.f32 %v660_v60, %v595_v59 }
 0x123   : > { %v837_v63 = vmul.f32 %v796_v62, %v661_v61 }
 0x125   : > { %935 = vmatmul.f32.gmra.mxu2 %v837_v63 }
 0x126   : > { %v989_v49 = vpop.f32.mrf.mxu3 }
 0x127   : > { %v598_v1 = vpop.f32.mrf.mxu0 }
 0x128   : > { %v663_v2 = vpop.f32.mrf.mxu1 }
 0x129   : > { %v664_v3 = vadd.f32 %v663_v2, %v598_v1 }
 0x12b   : > { %v838_v5 = vmul.f32 %v801_v4, %v664_v3 }
 0x12d   : > { %938 = vmatmul.f32.gmra.mxu2 %v838_v5 }
 0x12e   : > { %v992_v55 = vpop.f32.mrf.mxu3 }
 0x12f   : > { %v601_v7 = vpop.f32.mrf.mxu0 }
 0x130   : > { %v666_v8 = vpop.f32.mrf.mxu1 }
 0x131   : > { %v667_v9 = vadd.f32 %v666_v8, %v601_v7 }
 0x133   : > { %v839_v11 = vmul.f32 %v806_v10, %v667_v9 }
 0x135   : > { %941 = vmatmul.f32.gmra.mxu2 %v839_v11 }
 0x136   : > { %v995_v61 = vpop.f32.mrf.mxu3 }
 0x137   : > { %v604_v13 = vpop.f32.mrf.mxu0 }
 0x138   : > { %v669_v14 = vpop.f32.mrf.mxu1 }
 0x139   : > { %v670_v15 = vadd.f32 %v669_v14, %v604_v13 }
 0x13b   : > { %v840_v17 = vmul.f32 %v811_v16, %v670_v15 }
 0x13d   : > { %944 = vmatmul.f32.gmra.mxu2 %v840_v17 }
 0x13e   : > { %v998_v3 = vpop.f32.mrf.mxu3 }
 0x13f   : > { %v607_v18 = vpop.f32.mrf.mxu0 }
 0x140   : > { %v672_v19 = vpop.f32.mrf.mxu1 }
 0x141   : > { %v673_v20 = vadd.f32 %v672_v19, %v607_v18 }
 0x143   : > { %v841_v23 = vmul.f32 %v816_v22, %v673_v20 }
 0x145   : > { %947 = vmatmul.f32.gmra.mxu2 %v841_v23 }
 0x146   : > { %v1001_v9 = vpop.f32.mrf.mxu3 }
 0x147   : > { %v610_v24 = vpop.f32.mrf.mxu0 }
 0x148   : > { %v675_v25 = vpop.f32.mrf.mxu1 }
 0x149   : > { %v676_v26 = vadd.f32 %v675_v25, %v610_v24 }
 0x14b   : > { %v842_v29 = vmul.f32 %v821_v27, %v676_v26 }
 0x14d   : > { %950 = vmatmul.f32.gmra.mxu2 %v842_v29 }
 0x14e   : > { %v1004_v15 = vpop.f32.mrf.mxu3 }
 0x14f   : > { %v613_v30 = vpop.f32.mrf.mxu0 }
 0x150   : > { %v678_v31 = vpop.f32.mrf.mxu1 }
 0x151   : > { %v679_v32 = vadd.f32 %v678_v31, %v613_v30 }
 0x153   : > { %v843_v34 = vmul.f32 %v826_v33, %v679_v32 }
 0x155   : > { %953 = vmatmul.f32.gmra.mxu2 %v843_v34 }
 0x160   : > { %v909_v38 = vpop.f32.mrf.mxu2 }
 0x161   : > { %v975_v39 = vadd.f32 %v974_v21, %v909_v38  ;;  %v1007_v21 = vpop.f32.mrf.mxu3 }
 0x163   : > { %v1026_v40 = vadd.f32 %v1846_v37, %v975_v39 }
 0x165   : > { %v1042_v41 = vmax.f32 %v1026_v40, 0.0 }
 0x167   : > { %1058 = vst [vmem:[%s1850_s14] sm:$0xff] %v1042_v41 }
 0x168   : > { %v912_v42 = vpop.f32.mrf.mxu2 }
 0x169   : > { %v978_v44 = vadd.f32 %v977_v28, %v912_v42  ;;  %v1010_v27 = vpop.f32.mrf.mxu3 }
 0x16b   : > { %v1027_v45 = vadd.f32 %v1846_v37, %v978_v44 }
 0x16d   : > { %v1043_v46 = vmax.f32 %v1027_v45, 0.0 }
 0x16f   : > { %1059 = vst [vmem:[%s1850_s14 + $0x8] sm:$0xff] %v1043_v46 }
 0x170   : > { %v915_v47 = vpop.f32.mrf.mxu2 }
 0x171   : > { %v981_v48 = vadd.f32 %v980_v35, %v915_v47  ;;  %v1013_v33 = vpop.f32.mrf.mxu3 }
 0x173   : > { %v1028_v50 = vadd.f32 %v1846_v37, %v981_v48 }
 0x175   : > { %v1044_v51 = vmax.f32 %v1028_v50, 0.0 }
 0x177   : > { %1060 = vst [vmem:[%s1850_s14 + $0x10] sm:$0xff] %v1044_v51 }
 0x178   : > { %v918_v52 = vpop.f32.mrf.mxu2 }
 0x179   : > { %v984_v53 = vadd.f32 %v983_v36, %v918_v52  ;;  %v1016_v40 = vpop.f32.mrf.mxu3 }
 0x17b   : > { %v1029_v54 = vadd.f32 %v1846_v37, %v984_v53 }
 0x17d   : > { %v1045_v56 = vmax.f32 %v1029_v54, 0.0 }
 0x17f   : > { %1061 = vst [vmem:[%s1850_s14 + $0x18] sm:$0xff] %v1045_v56 }
 0x180   : > { %v921_v57 = vpop.f32.mrf.mxu2 }
 0x181   : > { %v987_v58 = vadd.f32 %v986_v43, %v921_v57  ;;  %v1019_v46 = vpop.f32.mrf.mxu3 }
 0x183   : > { %v1030_v59 = vadd.f32 %v1846_v37, %v987_v58 }
 0x185   : > { %v1046_v60 = vmax.f32 %v1030_v59, 0.0 }
 0x187   : > { %1062 = vst [vmem:[%s1850_s14 + $0x20] sm:$0xff] %v1046_v60 }
 0x188   : > { %v924_v62 = vpop.f32.mrf.mxu2 }
 0x189   : > { %v990_v63 = vadd.f32 %v989_v49, %v924_v62 }
 0x18b   : > { %v1031_v0 = vadd.f32 %v1846_v37, %v990_v63 }
 0x18d   : > { %v1047_v1 = vmax.f32 %v1031_v0, 0.0 }
 0x18f   : > { %1063 = vst [vmem:[%s1850_s14 + $0x28] sm:$0xff] %v1047_v1 }
 0x190   : > { %v927_v2 = vpop.f32.mrf.mxu2 }
 0x191   : > { %v993_v4 = vadd.f32 %v992_v55, %v927_v2 }
 0x193   : > { %v1032_v5 = vadd.f32 %v1846_v37, %v993_v4 }
 0x195   : > { %v1048_v6 = vmax.f32 %v1032_v5, 0.0 }
 0x197   : > { %1064 = vst [vmem:[%s1850_s14 + $0x30] sm:$0xff] %v1048_v6 }
 0x198   : > { %v930_v7 = vpop.f32.mrf.mxu2 }
 0x199   : > { %v996_v8 = vadd.f32 %v995_v61, %v930_v7 }
 0x19b   : > { %v1033_v10 = vadd.f32 %v1846_v37, %v996_v8 }
 0x19d   : > { %v1049_v11 = vmax.f32 %v1033_v10, 0.0 }
 0x19f   : > { %1065 = vst [vmem:[%s1850_s14 + $0x38] sm:$0xff] %v1049_v11 }
 0x1a0   : > { %v933_v12 = vpop.f32.mrf.mxu2 }
 0x1a1   : > { %v999_v13 = vadd.f32 %v998_v3, %v933_v12 }
 0x1a3   : > { %v1034_v14 = vadd.f32 %v1846_v37, %v999_v13 }
 0x1a5   : > { %v1050_v16 = vmax.f32 %v1034_v14, 0.0 }
 0x1a7   : > { %1066 = vst [vmem:[%s1850_s14 + $0x40] sm:$0xff] %v1050_v16 }
 0x1a8   : > { %v936_v17 = vpop.f32.mrf.mxu2 }
 0x1a9   : > { %v1002_v18 = vadd.f32 %v1001_v9, %v936_v17 }
 0x1ab   : > { %v1035_v19 = vadd.f32 %v1846_v37, %v1002_v18 }
 0x1ad   : > { %v1051_v20 = vmax.f32 %v1035_v19, 0.0 }
 0x1af   : > { %1067 = vst [vmem:[%s1850_s14 + $0x48] sm:$0xff] %v1051_v20 }
 0x1b0   : > { %v939_v22 = vpop.f32.mrf.mxu2 }
 0x1b1   : > { %v1005_v23 = vadd.f32 %v1004_v15, %v939_v22 }
 0x1b3   : > { %v1036_v24 = vadd.f32 %v1846_v37, %v1005_v23 }
 0x1b5   : > { %v1052_v25 = vmax.f32 %v1036_v24, 0.0 }
 0x1b7   : > { %1068 = vst [vmem:[%s1850_s14 + $0x50] sm:$0xff] %v1052_v25 }
 0x1b8   : > { %v942_v26 = vpop.f32.mrf.mxu2 }
 0x1b9   : > { %v1008_v28 = vadd.f32 %v1007_v21, %v942_v26 }
 0x1bb   : > { %v1037_v29 = vadd.f32 %v1846_v37, %v1008_v28 }
 0x1bd   : > { %v1053_v30 = vmax.f32 %v1037_v29, 0.0 }
 0x1bf   : > { %1069 = vst [vmem:[%s1850_s14 + $0x58] sm:$0xff] %v1053_v30 }
 0x1c0   : > { %v945_v31 = vpop.f32.mrf.mxu2 }
 0x1c1   : > { %v1011_v32 = vadd.f32 %v1010_v27, %v945_v31 }
 0x1c3   : > { %v1038_v34 = vadd.f32 %v1846_v37, %v1011_v32 }
 0x1c5   : > { %v1054_v35 = vmax.f32 %v1038_v34, 0.0 }
 0x1c7   : > { %1070 = vst [vmem:[%s1850_s14 + $0x60] sm:$0xff] %v1054_v35 }
 0x1c8   : > { %v948_v36 = vpop.f32.mrf.mxu2 }
 0x1c9   : > { %v1014_v38 = vadd.f32 %v1013_v33, %v948_v36 }
 0x1cb   : > { %v1039_v39 = vadd.f32 %v1846_v37, %v1014_v38 }
 0x1cd   : > { %v1055_v41 = vmax.f32 %v1039_v39, 0.0 }
 0x1cf   : > { %1071 = vst [vmem:[%s1850_s14 + $0x68] sm:$0xff] %v1055_v41 }
 0x1d0   : > { %v951_v42 = vpop.f32.mrf.mxu2 }
 0x1d1   : > { %v1017_v43 = vadd.f32 %v1016_v40, %v951_v42 }
 0x1d3   : > { %v1040_v44 = vadd.f32 %v1846_v37, %v1017_v43 }
 0x1d5   : > { %v1056_v45 = vmax.f32 %v1040_v44, 0.0 }
 0x1d7   : > { %1072 = vst [vmem:[%s1850_s14 + $0x70] sm:$0xff] %v1056_v45 }
 0x1d8   : > { %v954_v47 = vpop.f32.mrf.mxu2 }
 0x1d9   : > { %v1020_v48 = vadd.f32 %v1019_v46, %v954_v47 }
 0x1db   : > { %v1041_v49 = vadd.f32 %v1846_v37, %v1020_v48 }
 0x1dd   : > { %v1057_v50 = vmax.f32 %v1041_v49, 0.0 }
 0x1df   : > { %1073 = vst [vmem:[%s1850_s14 + $0x78] sm:$0xff] %v1057_v50 }
 0x1e0   : > { %1512 = shalt.err (!%p1509_p5)
}
 0x1e1   : > { %s1587_s21 = smov 128   ;;  %s1588_s8 = smov 8  }
 0x1e2   : > { %1277 = dma.vmem_to_hbm [thread:$0]  (%p1725_p3), %s1088_s1, 2048, %s1090_s5, %s1075_s27, %s1587_s21, %s1587_s21, %s1588_s8  }
 0x1e3 PF: > { %s1104_s15 = sand.u32 1, %s1559_s24   ;;  %p1294_p7 = pnand %p1240_p10, %p1674_p6 }
 0x1e4   : > { %s1105_s14 = scalar_lea.sflag [#allocation5], %s1104_s15 }
 0x1e5   : > { %p1295_p9 = pneg %p1294_p7 }
 0x1e7   : > { %1554 = dma.done.wait (%p1295_p9), %s1105_s14, 2048  }
 0x1e8   : > { %1556 = vsyncadd (%p1295_p9), %s1105_s14, 4294965248  ;;  %s25_s29 = sadd.s32 1, %s1579_s29   ;;  %s1952_s20 = sld [smem:[#allocation18_spill]] }
 0x1e9   : > { %p22_p2 = scmp.ge.s32.totalorder %s25_s29, 4   ;;  %s1953_s24 = smov %s1563_s25 }
 0x1ea   : > { %s1954_s25 = smov %s1567_s26  ;;  %s1955_s26 = smov %s1739_s13 }
 0x1eb   : > { %s1956_s27 = smov %s1575_s28  ;;  %24 = sbr.rel (!%p22_p2) target bundleno = 12 (0xc), region = 121 }
 0x1ee   : > { %s1957_s28 = smov %s1952_s20 }
 0x1f0   :  { %1111 = vsyncpa [#allocation4], 1 }
 0x1f1   :  { %1113 = vsyncpa [#allocation4 + $0x1], 1 }
 0x1f2   :  { %1114 = vsyncpa [#allocation7], 1 }
 0x1f3   :  { %1116 = vsyncpa [#allocation7 + $0x1], 1 }
 0x1f4   :  { %1117 = vsyncpa [#allocation10], 1 }
 0x1f5   :  { %1118 = vsyncpa [#allocation5], 1 }
 0x1f6   :  { %1120 = vsyncpa [#allocation5 + $0x1], 1 }

</bundles_post_ra>
